<compile_context>
chip_gen: v7x
topology: tpu7x:2x2x1
jax: 0.10.0
libtpu: 0.0.40
codegen_flags: <defaults>
</compile_context>

<pallas_src>
import functools

import jax
import jax.numpy as jnp
from jax import lax
from jax.experimental import pallas as pl
from jax.experimental.pallas import tpu as pltpu

C_IN, L_IN = 64, 100          # x: (B, 64, 100)
H1, M1 = 128, 32              # layer1: Linear(100,128); mat1: (128,32)
CONV_OUT, KW = 6, 3           # Conv1d(64, 6, 3)
OC_PAD = 8                    # conv out-channels padded 6 -> 8 inside the kernel only
L_CONV = M1 - KW + 1          # 30
H2, M2 = 64, 512              # layer2: Linear(30,64); mat2: (64,512)


def _round_up(n, m):
    return ((n + m - 1) // m) * m


def _pick_tiles(batch, tb_max=64):
    """Pick (samples per grid step, samples per block-diagonal conv group)."""
    group = next(g for g in (16, 8, 4, 2, 1) if g <= max(1, min(16, batch)))
    tb = min(tb_max, _round_up(batch, group))
    if batch >= 32 and 2 * tb > batch:          # keep grid >= 2 (v7x megacore)
        tb = _round_up((batch + 1) // 2, group)
    tb = max(group, (tb // group) * group)
    return tb, group


def _fold_params(raw, group, dtype):
    """Host-side algebraic folding (tiny one-time glue, no batch-sized arrays)."""
    w1, b1, mat1, wc, bc, w2, b2, mat2 = raw
    # layer1 o mat1, with relu((h+2)*0.05) == relu(0.05*h + 0.1) folded in.
    w1f = 0.05 * (w1.T @ mat1)                                   # (100, 32)
    b1f = (0.05 * (b1 @ mat1) + 0.1).reshape(1, M1)              # (1, 32)
    # layer2 o mat2, plus conv-bias / layer2-bias folded into one (6,512) bias.
    w2m2 = w2.T @ mat2                                           # (30, 512)
    biasf = bc[:, None] * jnp.sum(w2m2, axis=0)[None, :] + (b2 @ mat2)[None, :]
    # Block-diagonal conv channel-mix weight: kron(I_group, conv tap) per tap.
    wc8 = jnp.pad(wc, ((0, OC_PAD - CONV_OUT), (0, 0), (0, 0)))  # (8, 64, 3)
    eye = jnp.eye(group, dtype=wc.dtype)
    wcbd = jnp.concatenate(
        [jnp.kron(eye, wc8[:, :, k]) for k in range(KW)], axis=0)  # (3*g*8, g*64)
    return (w1f.astype(dtype), b1f.astype(jnp.float32), wcbd.astype(dtype),
            w2m2.astype(dtype), biasf.astype(jnp.float32))


def _kernel(x_ref, w1f_ref, b1f_ref, wcbd_ref, w2m2_ref, bias_ref, out_ref,
            *, tb, group, batch):
    cdt = w1f_ref.dtype
    n_grp = tb // group
    s = group * OC_PAD                              # rows per tap / per group

    # Stage 1: fused layer1+mat1+ReLU consts, batch folded into matmul M.
    x2 = x_ref[...].reshape(tb * C_IN, L_IN).astype(cdt)          # (tb*64, 100)
    h = jnp.dot(x2, w1f_ref[...], preferred_element_type=jnp.float32)
    h = jnp.maximum(h + b1f_ref[...], 0.0)                        # (tb*64, 32) f32

    # Ragged last batch block: zero garbage rows so they cannot leak through the
    # block-diagonal group matmul (0 * garbage stays 0 only if garbage is zeroed).
    if batch % tb != 0:
        rows = lax.broadcasted_iota(jnp.int32, (tb * C_IN, 1), 0)
        lim = (batch - pl.program_id(0) * tb) * C_IN
        h = jnp.where(rows < lim, h, 0.0)

    h = h.astype(cdt)
    for g in range(n_grp):
        # Stage 2: conv channel mix for `group` samples at once via the
        # block-diagonal weight: (3*group*8, group*64) @ (group*64, 32).
        hg = h[g * group * C_IN:(g + 1) * group * C_IN, :]
        r = jnp.dot(wcbd_ref[...], hg, preferred_element_type=jnp.float32)
        # Combine the 3 taps with shifted lane slices -> valid conv (group*8, 30).
        conv = (r[0:s, 0:L_CONV]
                + r[s:2 * s, 1:1 + L_CONV]
                + r[2 * s:3 * s, 2:2 + L_CONV])
        # Stage 3: fused layer2+mat2 (+folded biases): (group*8, 30) @ (30, 512).
        res = jnp.dot(conv.astype(cdt), w2m2_ref[...],
                      preferred_element_type=jnp.float32)
        res = res.reshape(group, OC_PAD, M2)[:, :CONV_OUT, :] + bias_ref[...][None]
        out_ref[g * group:(g + 1) * group, :, :] = res.astype(out_ref.dtype)


def sample_model_forward(x, raw_params, *, tb_max=64, compute_dtype=jnp.float32):
    batch = x.shape[0]
    assert x.shape[1:] == (C_IN, L_IN), x.shape
    tb, group = _pick_tiles(batch, tb_max)
    grid = pl.cdiv(batch, tb)
    n_grp = tb // group

    w1f, b1f, wcbd, w2m2, biasf = _fold_params(raw_params, group, compute_dtype)

    flops = int(grid) * (2 * tb * C_IN * L_IN * M1
                         + n_grp * 2 * (KW * group * OC_PAD) * (group * C_IN) * M1
                         + n_grp * 2 * (group * OC_PAD) * L_CONV * M2)
    bytes_accessed = (int(x.size) * x.dtype.itemsize
                      + batch * CONV_OUT * M2 * 4
                      + sum(int(a.size) * a.dtype.itemsize
                            for a in (w1f, b1f, wcbd, w2m2, biasf)))

    kernel = functools.partial(_kernel, tb=tb, group=group, batch=batch)
    out = pl.pallas_call(
        kernel,
        out_shape=jax.ShapeDtypeStruct((batch, CONV_OUT, M2), jnp.float32),
        grid_spec=pltpu.PrefetchScalarGridSpec(
            num_scalar_prefetch=0,
            grid=(grid,),
            in_specs=[
                pl.BlockSpec((tb, C_IN, L_IN), lambda i: (i, 0, 0)),            # x
                pl.BlockSpec((L_IN, M1), lambda i: (0, 0)),                     # fused W1
                pl.BlockSpec((1, M1), lambda i: (0, 0)),                        # fused b1
                pl.BlockSpec((KW * group * OC_PAD, group * C_IN),
                             lambda i: (0, 0)),                                 # conv blkdiag
                pl.BlockSpec((L_CONV, M2), lambda i: (0, 0)),                   # fused W2
                pl.BlockSpec((CONV_OUT, M2), lambda i: (0, 0)),                 # fused bias
            ],
            out_specs=pl.BlockSpec((tb, CONV_OUT, M2), lambda i: (i, 0, 0)),
        ),
        compiler_params=pltpu.CompilerParams(
            dimension_semantics=("parallel",),
            vmem_limit_bytes=32 * 1024 * 1024),
        cost_estimate=pl.CostEstimate(flops=flops, transcendentals=0,
                                      bytes_accessed=bytes_accessed),
    )(x, w1f, b1f, wcbd, w2m2, biasf)
    return out


def make_params(key):
    ks = jax.random.split(key, 8)
    w1 = jax.random.normal(ks[0], (H1, L_IN), jnp.float32) * 0.1   # Linear(100,128).weight
    b1 = jax.random.normal(ks[1], (H1,), jnp.float32) * 0.1
    mat1 = jax.random.normal(ks[2], (H1, M1), jnp.float32)
    wc = jax.random.normal(ks[3], (CONV_OUT, C_IN, KW), jnp.float32) * 0.1  # Conv1d weight
    bc = jax.random.normal(ks[4], (CONV_OUT,), jnp.float32) * 0.1
    w2 = jax.random.normal(ks[5], (H2, L_CONV), jnp.float32) * 0.1  # Linear(30,64).weight
    b2 = jax.random.normal(ks[6], (H2,), jnp.float32) * 0.1
    mat2 = jax.random.normal(ks[7], (H2, M2), jnp.float32)
    return (w1, b1, mat1, wc, bc, w2, b2, mat2)


def reference_forward(x, raw):
    # Pure-JAX reference mirroring the PyTorch forward exactly.
    w1, b1, mat1, wc, bc, w2, b2, mat2 = raw
    out = jnp.einsum("bcl,hl->bch", x, w1) + b1          # layer1
    out = out @ mat1                                      # matmul mat1
    out = jnp.maximum((out + 2.0) * 0.05, 0.0)            # relu((x+2)*0.05)
    out = lax.conv_general_dilated(                       # Conv1d(64, 6, 3)
        out, wc, window_strides=(1,), padding="VALID",
        dimension_numbers=("NCH", "OIH", "NCH")) + bc[None, :, None]
    out = jnp.einsum("bcl,hl->bch", out, w2) + b2         # layer2
    out = out @ mat2                                      # matmul mat2
    return out


if __name__ == "__main__":
    key = jax.random.PRNGKey(0)
    kx, kp = jax.random.split(key)
    B = 2
    x = jax.random.normal(kx, (B, C_IN, L_IN), jnp.float32)

    raw = make_params(kp)

    out = jax.block_until_ready(sample_model_forward(x, raw))   # f32 parity path
    ref = reference_forward(x, raw)

    assert out.shape == (B, CONV_OUT, M2), out.shape
    err = float(jnp.max(jnp.abs(out - ref)))
    assert jnp.allclose(out, ref, atol=2e-3, rtol=2e-3), err

    print("KERNEL_OK")
</pallas_src>

<mosaic_0001>
module attributes {stable_mosaic.version = 11 : i64} {
  func.func @_kernel(%arg0: i32, %arg1: memref<2x64x100xf32, #tpu.memory_space<vmem>>, %arg2: memref<100x32xf32, #tpu.memory_space<vmem>>, %arg3: memref<1x32xf32, #tpu.memory_space<vmem>>, %arg4: memref<48x128xf32, #tpu.memory_space<vmem>>, %arg5: memref<30x512xf32, #tpu.memory_space<vmem>>, %arg6: memref<6x512xf32, #tpu.memory_space<vmem>>, %arg7: memref<2x6x512xf32, #tpu.memory_space<vmem>>) attributes {dimension_semantics = [#tpu.dimension_semantics<parallel>], iteration_bounds = array<i64: 1>, scalar_prefetch = 0 : i64, scratch_operands = 0 : i64, tpu.core_type = #tpu.core_type<tc>, window_params = [{transform_indices = @transform_0, window_bounds = array<i64: 2, 64, 100>}, {pipeline_mode = #tpu.pipeline_mode<synchronous>, transform_indices = @transform_1, window_bounds = array<i64: 100, 32>}, {pipeline_mode = #tpu.pipeline_mode<synchronous>, transform_indices = @transform_2, window_bounds = array<i64: 1, 32>}, {pipeline_mode = #tpu.pipeline_mode<synchronous>, transform_indices = @transform_3, window_bounds = array<i64: 48, 128>}, {pipeline_mode = #tpu.pipeline_mode<synchronous>, transform_indices = @transform_4, window_bounds = array<i64: 30, 512>}, {pipeline_mode = #tpu.pipeline_mode<synchronous>, transform_indices = @transform_5, window_bounds = array<i64: 6, 512>}, {transform_indices = @transform_6, window_bounds = array<i64: 2, 6, 512>}]} {
    %c0 = arith.constant 0 : index
    %c0_0 = arith.constant 0 : index
    %c0_1 = arith.constant 0 : index
    %0 = vector.load %arg1[%c0, %c0_0, %c0_1] : memref<2x64x100xf32, #tpu.memory_space<vmem>>, vector<2x64x100xf32>
    %1 = vector.shape_cast %0 : vector<2x64x100xf32> to vector<128x100xf32>
    %c0_2 = arith.constant 0 : index
    %c0_3 = arith.constant 0 : index
    %2 = vector.load %arg2[%c0_2, %c0_3] : memref<100x32xf32, #tpu.memory_space<vmem>>, vector<100x32xf32>
    %cst = arith.constant dense<0.000000e+00> : vector<128x32xf32>
    %3 = tpu.matmul %1, %2, %cst {dimension_numbers = #tpu.dot_dimension_numbers<[1], [0], [0], [1], [0, 0, 1, 1], [], []>} : vector<128x100xf32>, vector<100x32xf32>, vector<128x32xf32> -> vector<128x32xf32>
    %c0_4 = arith.constant 0 : index
    %c0_5 = arith.constant 0 : index
    %4 = vector.load %arg3[%c0_4, %c0_5] : memref<1x32xf32, #tpu.memory_space<vmem>>, vector<1x32xf32>
    %5 = vector.broadcast %4 : vector<1x32xf32> to vector<128x32xf32>
    %6 = arith.addf %3, %5 : vector<128x32xf32>
    %cst_6 = arith.constant 0.000000e+00 : f32
    %7 = vector.broadcast %cst_6 : f32 to vector<128x32xf32>
    %8 = arith.maximumf %6, %7 : vector<128x32xf32>
    %c0_7 = arith.constant 0 : index
    %c0_8 = arith.constant 0 : index
    %9 = vector.load %arg4[%c0_7, %c0_8] : memref<48x128xf32, #tpu.memory_space<vmem>>, vector<48x128xf32>
    %cst_9 = arith.constant dense<0.000000e+00> : vector<48x32xf32>
    %10 = tpu.matmul %9, %8, %cst_9 {dimension_numbers = #tpu.dot_dimension_numbers<[1], [0], [0], [1], [0, 0, 1, 1], [], []>} : vector<48x128xf32>, vector<128x32xf32>, vector<48x32xf32> -> vector<48x32xf32>
    %11 = vector.extract_strided_slice %10 {offsets = [0, 0], sizes = [16, 30], strides = [1, 1]} : vector<48x32xf32> to vector<16x30xf32>
    %12 = vector.extract_strided_slice %10 {offsets = [16, 1], sizes = [16, 30], strides = [1, 1]} : vector<48x32xf32> to vector<16x30xf32>
    %13 = arith.addf %11, %12 : vector<16x30xf32>
    %14 = vector.extract_strided_slice %10 {offsets = [32, 2], sizes = [16, 30], strides = [1, 1]} : vector<48x32xf32> to vector<16x30xf32>
    %15 = arith.addf %13, %14 : vector<16x30xf32>
    %c0_10 = arith.constant 0 : index
    %c0_11 = arith.constant 0 : index
    %16 = vector.load %arg5[%c0_10, %c0_11] : memref<30x512xf32, #tpu.memory_space<vmem>>, vector<30x512xf32>
    %cst_12 = arith.constant dense<0.000000e+00> : vector<16x512xf32>
    %17 = tpu.matmul %15, %16, %cst_12 {dimension_numbers = #tpu.dot_dimension_numbers<[1], [0], [0], [1], [0, 0, 1, 1], [], []>} : vector<16x30xf32>, vector<30x512xf32>, vector<16x512xf32> -> vector<16x512xf32>
    %18 = vector.shape_cast %17 : vector<16x512xf32> to vector<2x8x512xf32>
    %19 = vector.extract_strided_slice %18 {offsets = [0, 0, 0], sizes = [2, 6, 512], strides = [1, 1, 1]} : vector<2x8x512xf32> to vector<2x6x512xf32>
    %c0_13 = arith.constant 0 : index
    %c0_14 = arith.constant 0 : index
    %20 = vector.load %arg6[%c0_13, %c0_14] : memref<6x512xf32, #tpu.memory_space<vmem>>, vector<6x512xf32>
    %21 = vector.shape_cast %20 : vector<6x512xf32> to vector<1x6x512xf32>
    %22 = vector.broadcast %21 : vector<1x6x512xf32> to vector<2x6x512xf32>
    %23 = arith.addf %19, %22 : vector<2x6x512xf32>
    %c0_15 = arith.constant 0 : index
    %c0_16 = arith.constant 0 : index
    %c0_17 = arith.constant 0 : index
    %24 = vector.load %arg7[%c0_15, %c0_16, %c0_17] : memref<2x6x512xf32, #tpu.memory_space<vmem>>, vector<2x6x512xf32>
    tpu.vector_store %arg7[%c0_15, %c0_16, %c0_17], %23 {strides = array<i32>} : memref<2x6x512xf32, #tpu.memory_space<vmem>>, vector<2x6x512xf32>,
    return
  }
  func.func @transform_0(%arg0: i32) -> (i32, i32, i32) {
    %c0_i32 = arith.constant 0 : i32
    %c0_i32_0 = arith.constant 0 : i32
    %c0_i32_1 = arith.constant 0 : i32
    return %arg0, %c0_i32, %c0_i32_0 : i32, i32, i32
  }
  func.func @transform_1(%arg0: i32) -> (i32, i32) {
    %c0_i32 = arith.constant 0 : i32
    %c0_i32_0 = arith.constant 0 : i32
    %c0_i32_1 = arith.constant 0 : i32
    return %c0_i32, %c0_i32_0 : i32, i32
  }
  func.func @transform_2(%arg0: i32) -> (i32, i32) {
    %c0_i32 = arith.constant 0 : i32
    %c0_i32_0 = arith.constant 0 : i32
    %c0_i32_1 = arith.constant 0 : i32
    return %c0_i32, %c0_i32_0 : i32, i32
  }
  func.func @transform_3(%arg0: i32) -> (i32, i32) {
    %c0_i32 = arith.constant 0 : i32
    %c0_i32_0 = arith.constant 0 : i32
    %c0_i32_1 = arith.constant 0 : i32
    return %c0_i32, %c0_i32_0 : i32, i32
  }
  func.func @transform_4(%arg0: i32) -> (i32, i32) {
    %c0_i32 = arith.constant 0 : i32
    %c0_i32_0 = arith.constant 0 : i32
    %c0_i32_1 = arith.constant 0 : i32
    return %c0_i32, %c0_i32_0 : i32, i32
  }
  func.func @transform_5(%arg0: i32) -> (i32, i32) {
    %c0_i32 = arith.constant 0 : i32
    %c0_i32_0 = arith.constant 0 : i32
    %c0_i32_1 = arith.constant 0 : i32
    return %c0_i32, %c0_i32_0 : i32, i32
  }
  func.func @transform_6(%arg0: i32) -> (i32, i32, i32) {
    %c0_i32 = arith.constant 0 : i32
    %c0_i32_0 = arith.constant 0 : i32
    %c0_i32_1 = arith.constant 0 : i32
    return %arg0, %c0_i32, %c0_i32_0 : i32, i32, i32
  }
}

</mosaic_0001>

<bundles_post_ra>
// kernel: tpu_custom_call.1
= control target key start
LH: loop header
LB: loop body
LE: loop exit
PB: predicated region body
PF: predicated region fallthrough
CT: control target
= control target key end

     0   :  { %11 = vsyncpa [#allocation3], 0  ;;  %s1220_s0 = inlined_call_operand.vmem [shape: f32[2,64,100], index: 0, kind: input, shape index: {}]   ;;  %s1221_s1 = inlined_call_operand.vmem [shape: f32[100,32], index: 1, kind: input, shape index: {}]   ;;  %s1222_s2 = inlined_call_operand.vmem [shape: f32[1,32], index: 2, kind: input, shape index: {}]   ;;  %s1223_s3 = inlined_call_operand.hbm [shape: f32[48,128], index: 3, kind: input, shape index: {}]   ;;  %s1224_s4 = inlined_call_operand.hbm [shape: f32[30,512], index: 4, kind: input, shape index: {}]   ;;  %s1225_s5 = inlined_call_operand.hbm [shape: f32[6,512], index: 5, kind: input, shape index: {}]   ;;  %s1226_s6 = inlined_call_operand.vmem [shape: f32[2,6,512], index: 6, kind: output, shape index: {}]  }
   0x1   :  { %12 = vsyncpa [#allocation5], 0  ;;  %s974_s21 = smov [#allocation4]   ;;  %s904_s25 = scalar_lea.hbm %s1224_s4, 2048 }
   0x2   :  { %s36_s22 = sshll.u32 %s974_s21, 4  ;;  %p905_p0 = scmp.ne.s32.totalorder %s1224_s4, %s904_s25  ;;  %s37_s22 = int_to_ptr.vmem [resolvable:$true] %s36_s22 }
   0x3   :  { %p908_p1 = scmp.lt.u32.totalorder %s904_s25, %s1224_s4 }
   0x5   :  { %p910_p2 = pnand %p908_p1, %p905_p0 }
   0x7   :  { %913 = shalt.err (!%p910_p2)
}
   0x8   :  { %s914_s30 = scalar_lea.vmem %s37_s22, 2048  ;;  %p919_p4 = scmp.lt.s32.totalorder %s37_s22, %s37_s22 }
   0x9   :  { %p915_p3 = scmp.ne.s32.totalorder %s37_s22, %s914_s30  ;;  %p920_p5 = scmp.lt.s32.totalorder %s914_s30, %s914_s30 }
   0xb   :  { %p921_p6 = por %p920_p5, %p919_p4 }
   0xd   :  { %p922_p7 = pnand %p921_p6, %p915_p3 }
   0xf   :  { %925 = shalt.err (!%p922_p7)
}
  0x10   :  { %s975_s7 = smov 512   ;;  %s976_s8 = smov 32  }
  0x11   :  { %42 = dma.hbm_to_vmem [thread:$0]  %s1224_s4, 2048, %s37_s22, [#allocation5], %s975_s7, %s975_s7, %s976_s8  }
  0x12   :  { %s977_s11 = smov [#allocation2]   ;;  %s926_s15 = scalar_lea.hbm %s1223_s3, 768 }
  0x13   :  { %s24_s12 = sshll.u32 %s977_s11, 4  ;;  %p927_p8 = scmp.ne.s32.totalorder %s1223_s3, %s926_s15  ;;  %s25_s12 = int_to_ptr.vmem [resolvable:$true] %s24_s12 }
  0x14   :  { %p930_p9 = scmp.lt.u32.totalorder %s926_s15, %s1223_s3 }
  0x16   :  { %p932_p10 = pnand %p930_p9, %p927_p8 }
  0x18   :  { %935 = shalt.err (!%p932_p10)
}
  0x19   :  { %s936_s20 = scalar_lea.vmem %s25_s12, 768  ;;  %p941_p12 = scmp.lt.s32.totalorder %s25_s12, %s25_s12 }
  0x1a   :  { %p937_p11 = scmp.ne.s32.totalorder %s25_s12, %s936_s20  ;;  %p942_p13 = scmp.lt.s32.totalorder %s936_s20, %s936_s20 }
  0x1c   :  { %p943_p0 = por %p942_p13, %p941_p12 }
  0x1e   :  { %p944_p1 = pnand %p943_p0, %p937_p11 }
  0x20   :  { %947 = shalt.err (!%p944_p1)
}
  0x21   :  { %s978_s4 = smov 128   ;;  %s979_s21 = smov 8  }
  0x22   :  { %30 = dma.hbm_to_vmem [thread:$0]  %s1223_s3, 768, %s25_s12, [#allocation3], %s978_s4, %s978_s4, %s979_s21  }
  0x23   :  { %s980_s24 = smov [#allocation6]   ;;  %s948_s28 = scalar_lea.hbm %s1225_s5, 512 }
  0x24   :  { %s49_s25 = sshll.u32 %s980_s24, 4  ;;  %p949_p2 = scmp.ne.s32.totalorder %s1225_s5, %s948_s28  ;;  %s50_s25 = int_to_ptr.vmem [resolvable:$true] %s49_s25 }
  0x25   :  { %p952_p3 = scmp.lt.u32.totalorder %s948_s28, %s1225_s5 }
  0x27   :  { %p954_p4 = pnand %p952_p3, %p949_p2 }
  0x29   :  { %957 = shalt.err (!%p954_p4)
}
  0x2a   :  { %s958_s9 = scalar_lea.vmem %s50_s25, 512  ;;  %p963_p6 = scmp.lt.s32.totalorder %s50_s25, %s50_s25 }
  0x2b   :  { %p959_p5 = scmp.ne.s32.totalorder %s50_s25, %s958_s9  ;;  %p964_p7 = scmp.lt.s32.totalorder %s958_s9, %s958_s9 }
  0x2d   :  { %p965_p8 = por %p964_p7, %p963_p6 }
  0x2f   :  { %p966_p9 = pnand %p965_p8, %p959_p5 }
  0x31   :  { %969 = shalt.err (!%p966_p9)
}
  0x32   :  { %52 = dma.hbm_to_vmem [thread:$0]  %s1225_s5, 512, %s50_s25, [#allocation5]  }
  0x33   :  { %970 = dma.done.wait [#allocation3], 768  }
  0x34   :  { %971 = vsyncadd [#allocation3], 4294966528 }
  0x35   :  { %972 = dma.done.wait [#allocation5], 2560  }
  0x36   :  { %973 = vsyncadd [#allocation5], 4294964736  ;;  %v78_v0 = vld [vmem:[%s1221_s1] sm:$0xff]  ;;  %v79_v1 = vld [vmem:[%s1221_s1 + $0x8] sm:$0xff]  ;;  %vm98_vm0 = vcmask 818176   ;;  %vm147_vm1 = vcmask 1043456  }
  0x37   :  { %v80_v2 = vld [vmem:[%s1221_s1 + $0x10] sm:$0xff]  ;;  %v817_v3 = vpack.c.bf16 %v79_v1, %v78_v0  ;;  %v81_v4 = vld [vmem:[%s1221_s1 + $0x18] sm:$0xff]  ;;  %v82_v6 = vld [vmem:[%s1221_s1 + $0x20] sm:$0xff]  ;;  %vm456_vm2 = vcmask 1045504   ;;  %vm981_vm3 = vmmov 1   ;;  %vm449_vm5 = vcmask 244736  }
  0x38   :  { %v821_v5 = vpack.c.bf16 %v81_v4, %v80_v2  ;;  %v83_v7 = vld [vmem:[%s1221_s1 + $0x28] sm:$0xff]  ;;  %v62_v8 = vld [vmem:[%s1220_s0] sm:$0xff]  ;;  %v84_v10 = vld [vmem:[%s1221_s1 + $0x30] sm:$0xff] }
  0x39   :  { %818 = vmatprep.subr.bf16.mxu0 %v817_v3  ;;  %v825_v9 = vpack.c.bf16 %v83_v7, %v82_v6  ;;  %752 = vmatprep.mubr.msk.f32.mxu0 %vm98_vm0, %v62_v8  ;;  %v85_v11 = vld [vmem:[%s1221_s1 + $0x38] sm:$0xff]  ;;  %v86_v13 = vld [vmem:[%s1221_s1 + $0x40] sm:$0xff]  ;;  %v87_v14 = vld [vmem:[%s1221_s1 + $0x48] sm:$0xff] }
  0x3a   :  { %820 = vmatpush3.bf16.msra.mxu0 %v817_v3  ;;  %v829_v12 = vpack.c.bf16 %v85_v11, %v84_v10  ;;  %v833_v15 = vpack.c.bf16 %v87_v14, %v86_v13  ;;  %v88_v16 = vld [vmem:[%s1221_s1 + $0x50] sm:$0xff]  ;;  %v89_v17 = vld [vmem:[%s1221_s1 + $0x58] sm:$0xff]  ;;  %v90_v19 = vld [vmem:[%s1221_s1 + $0x60] sm:$0xf] }
  0x3b   :  { %822 = vmatprep.subr.bf16.mxu0 %v821_v5  ;;  %v837_v18 = vpack.c.bf16 %v89_v17, %v88_v16  ;;  %v63_v20 = vld [vmem:[%s1220_s0 + $0x8] sm:$0xff]  ;;  %v64_v21 = vld [vmem:[%s1220_s0 + $0x10] sm:$0xff]  ;;  %v65_v22 = vld [vmem:[%s1220_s0 + $0x18] sm:$0xff] }
  0x3c   :  { %v66_v23 = vld [vmem:[%s1220_s0 + $0x20] sm:$0xff]  ;;  %v67_v24 = vld [vmem:[%s1220_s0 + $0x28] sm:$0xff]  ;;  %v68_v25 = vld [vmem:[%s1220_s0 + $0x30] sm:$0xff] }
  0x3d   :  { %v69_v26 = vld [vmem:[%s1220_s0 + $0x38] sm:$0xff]  ;;  %v70_v27 = vld [vmem:[%s1220_s0 + $0x40] sm:$0xff]  ;;  %v71_v28 = vld [vmem:[%s1220_s0 + $0x48] sm:$0xff] }
  0x3e   :  { %824 = vmatpush3.bf16.msra.mxu0 %v821_v5  ;;  %v72_v29 = vld [vmem:[%s1220_s0 + $0x50] sm:$0xff]  ;;  %v73_v30 = vld [vmem:[%s1220_s0 + $0x58] sm:$0xff]  ;;  %v74_v31 = vld [vmem:[%s1220_s0 + $0x60] sm:$0xff] }
  0x3f   :  { %826 = vmatprep.subr.bf16.mxu0 %v825_v9  ;;  %v75_v32 = vld [vmem:[%s1220_s0 + $0x68] sm:$0xff]  ;;  %v76_v33 = vld [vmem:[%s1220_s0 + $0x70] sm:$0xff]  ;;  %v77_v34 = vld [vmem:[%s1220_s0 + $0x78] sm:$0xff]  ;;  %s983_s0 = smov 127  }
  0x40   :  { %v312_v35 = vld [vmem:[#allocation2] sm:$0xff]  ;;  %vm1180_vm4 = vmpackc.low %vm456_vm2, %vm981_vm3 }
  0x41   :  { %808 = vmatprep.mubr.f32.mxu1 %v312_v35  ;;  %v1162_v36 = vld [vmem:[%s1222_s2] ss:$0 sm:$0xff]  ;;  %v438_v35 = vld [vmem:[#allocation4 + $0x28] sm:$0xff]  ;;  %s984_s2 = smov 126  }
  0x42   :  { %828 = vmatpush3.bf16.msra.mxu0 %v825_v9 }
  0x43   :  { %830 = vmatprep.subr.bf16.mxu0 %v829_v12 }
  0x46   :  { %832 = vmatpush3.bf16.msra.mxu0 %v829_v12 }
  0x47   :  { %834 = vmatprep.subr.bf16.mxu0 %v833_v15 }
  0x4a   :  { %836 = vmatpush3.bf16.msra.mxu0 %v833_v15 }
  0x4b   :  { %838 = vmatprep.subr.bf16.mxu0 %v837_v18 }
  0x4e   :  { %840 = vmatpush3.bf16.msra.mxu0 %v837_v18 }
  0x4f   :  { %750 = vmatprep.subr.msk.mxu0 %vm147_vm1, %v90_v19 }
  0x52   :  { %751 = vmatpush3.msk.msra.mxu0 %vm147_vm1, %v90_v19 }
  0x53   :  { %753 = vmatmul.mubr.msk.f32.vlgmr.msra.gmra.mrb[0].mxu0 %vm98_vm0, %v63_v20 }
  0x54   :  { %755 = vmatprep.mubr.msk.f32.mxu0 %vm98_vm0, %v64_v21 }
  0x57   :  { %756 = vmatmul.mubr.msk.f32.gmra.mrb[2].mxu0 %vm98_vm0, %v65_v22 }
  0x58   :  { %758 = vmatprep.mubr.msk.f32.mxu0 %vm98_vm0, %v66_v23 }
  0x5b   :  { %759 = vmatmul.mubr.msk.f32.gmra.mrb[4].mxu0 %vm98_vm0, %v67_v24 }
  0x5c   :  { %761 = vmatprep.mubr.msk.f32.mxu0 %vm98_vm0, %v68_v25 }
  0x5f   :  { %762 = vmatmul.mubr.msk.f32.gmra.mrb[6].mxu0 %vm98_vm0, %v69_v26 }
  0x60   :  { %764 = vmatprep.mubr.msk.f32.mxu0 %vm98_vm0, %v70_v27 }
  0x63   :  { %765 = vmatmul.mubr.msk.f32.gmra.mrb[8].mxu0 %vm98_vm0, %v71_v28 }
  0x64   :  { %767 = vmatprep.mubr.msk.f32.mxu0 %vm98_vm0, %v72_v29  ;;  %v313_v29 = vld [vmem:[#allocation2 + $0x8] sm:$0xff] }
  0x67   :  { %768 = vmatmul.mubr.msk.f32.gmra.mrb[10].mxu0 %vm98_vm0, %v73_v30  ;;  %v314_v30 = vld [vmem:[#allocation2 + $0x10] sm:$0xff] }
  0x68   :  { %770 = vmatprep.mubr.msk.f32.mxu0 %vm98_vm0, %v74_v31  ;;  %v315_v31 = vld [vmem:[#allocation2 + $0x18] sm:$0xff] }
  0x6b   :  { %771 = vmatmul.mubr.msk.f32.gmra.mrb[12].mxu0 %vm98_vm0, %v75_v32  ;;  %v316_v32 = vld [vmem:[#allocation2 + $0x20] sm:$0xff] }
  0x6c   :  { %773 = vmatprep.mubr.msk.f32.mxu0 %vm98_vm0, %v76_v33  ;;  %v317_v33 = vld [vmem:[#allocation2 + $0x28] sm:$0xff] }
  0x6f   :  { %774 = vmatmul.mubr.msk.f32.gmra.mrb[14].mxu0 %vm98_vm0, %v77_v34  ;;  %v434_v34 = vld [vmem:[#allocation4 + $0x8] sm:$0xff] }
 0x126   :  { %v754_v37 = vpop.f32.mrb[0].mxu0 }
 0x127   :  { %v223_v38 = vadd.f32 %v754_v37, %v1162_v36  ;;  %v217_v39 = vpop.f32.mrb[1].mxu0  ;;  %v873_v37 = vpack.c.bf16 %v438_v35, %v434_v34 }
 0x128   :  { %v218_v40 = vadd.f32 %v1162_v36, %v217_v39 }
 0x129   :  { %v297_v41 = vmax.f32 %v223_v38, 0.0  ;;  %v437_v38 = vld [vmem:[#allocation4 + $0x20] sm:$0xff] }
 0x12a   :  { %v296_v42 = vmax.f32 %v218_v40, 0.0  ;;  %v757_v43 = vpop.f32.mrb[2].mxu0  ;;  %v442_v40 = vld [vmem:[#allocation4 + $0x48] sm:$0xff] }
 0x12b   :  { %v233_v44 = vadd.f32 %v757_v43, %v1162_v36  ;;  %v227_v45 = vpop.f32.mrb[3].mxu0 }
 0x12c   :  { %v228_v46 = vadd.f32 %v1162_v36, %v227_v45  ;;  %v841_v47 = vpack.c.bf16 %v297_v41, %v296_v42  ;;  %v446_v41 = vld [vmem:[#allocation4 + $0x68] sm:$0x3f]  ;;  %v445_v45 = vld [vmem:[#allocation4 + $0x60] sm:$0x3f] }
 0x12d   :  { %v299_v48 = vmax.f32 %v233_v44, 0.0  ;;  %v877_v42 = vpack.c.bf16 %v446_v41, %v442_v40  ;;  %v441_v44 = vld [vmem:[#allocation4 + $0x40] sm:$0xff] }
 0x12e   :  { %v298_v49 = vmax.f32 %v228_v46, 0.0  ;;  %v760_v50 = vpop.f32.mrb[4].mxu0  ;;  %842 = vmatprep.subr.bf16.mxu1 %v841_v47  ;;  %v880_v46 = vpack.c.bf16 %v445_v45, %v441_v44 }
 0x12f   :  { %v243_v51 = vadd.f32 %v760_v50, %v1162_v36  ;;  %v237_v52 = vpop.f32.mrb[5].mxu0  ;;  %844 = vmatpush3.bf16.msra.mxu1 %v841_v47  ;;  %v436_v47 = vld [vmem:[#allocation4 + $0x18] sm:$0xff]  ;;  %v982_v50 = vmov 0.0  }
 0x130   :  { %v845_v53 = vpack.c.bf16 %v299_v48, %v298_v49  ;;  %v238_v54 = vadd.f32 %v1162_v36, %v237_v52  ;;  %v440_v48 = vld [vmem:[#allocation4 + $0x38] sm:$0xff] }
 0x131   :  { %v301_v55 = vmax.f32 %v243_v51, 0.0  ;;  %v883_v49 = vpack.c.bf16 %v440_v48, %v436_v47 }
 0x132   :  { %v300_v56 = vmax.f32 %v238_v54, 0.0  ;;  %v763_v57 = vpop.f32.mrb[6].mxu0  ;;  %846 = vmatprep.subr.bf16.mxu1 %v845_v53 }
 0x133   :  { %v253_v58 = vadd.f32 %v763_v57, %v1162_v36  ;;  %v247_v59 = vpop.f32.mrb[7].mxu0  ;;  %848 = vmatpush3.bf16.msra.mxu1 %v845_v53 }
 0x134   :  { %v849_v60 = vpack.c.bf16 %v301_v55, %v300_v56  ;;  %v248_v61 = vadd.f32 %v1162_v36, %v247_v59  ;;  %v435_v59 = vld [vmem:[#allocation4 + $0x10] sm:$0xff] }
 0x135   :  { %v303_v62 = vmax.f32 %v253_v58, 0.0 }
 0x136   :  { %v302_v63 = vmax.f32 %v248_v61, 0.0  ;;  %v766_v0 = vpop.f32.mrb[8].mxu0  ;;  %850 = vmatprep.subr.bf16.mxu1 %v849_v60  ;;  %v444_v61 = vld [vmem:[#allocation4 + $0x58] sm:$0xff] }
 0x137   :  { %v263_v1 = vadd.f32 %v766_v0, %v1162_v36  ;;  %v257_v2 = vpop.f32.mrb[9].mxu0  ;;  %852 = vmatpush3.bf16.msra.mxu1 %v849_v60  ;;  %v439_v60 = vld [vmem:[#allocation4 + $0x30] sm:$0xff] }
 0x138   :  { %v853_v3 = vpack.c.bf16 %v303_v62, %v302_v63  ;;  %v258_v4 = vadd.f32 %v1162_v36, %v257_v2  ;;  %v448_v62 = vld [vmem:[#allocation4 + $0x78] sm:$0x3f] }
 0x139   :  { %v305_v5 = vmax.f32 %v263_v1, 0.0  ;;  %v885_v1 = vpack.c.bf16 %v439_v60, %v435_v59 }
 0x13a   :  { %v304_v6 = vmax.f32 %v258_v4, 0.0  ;;  %v769_v7 = vpop.f32.mrb[10].mxu0  ;;  %854 = vmatprep.subr.bf16.mxu1 %v853_v3  ;;  %v443_v4 = vld [vmem:[#allocation4 + $0x50] sm:$0xff] }
 0x13b   :  { %v273_v8 = vadd.f32 %v769_v7, %v1162_v36  ;;  %v267_v9 = vpop.f32.mrb[11].mxu0  ;;  %856 = vmatpush3.bf16.msra.mxu1 %v853_v3  ;;  %v887_v3 = vpack.c.bf16 %v448_v62, %v444_v61 }
 0x13c   :  { %v857_v10 = vpack.c.bf16 %v305_v5, %v304_v6  ;;  %v268_v11 = vadd.f32 %v1162_v36, %v267_v9  ;;  %v447_v5 = vld [vmem:[#allocation4 + $0x70] sm:$0x3f] }
 0x13d   :  { %v307_v12 = vmax.f32 %v273_v8, 0.0  ;;  %v890_v8 = vpack.c.bf16 %v447_v5, %v443_v4 }
 0x13e   :  { %v306_v13 = vmax.f32 %v268_v11, 0.0  ;;  %v772_v14 = vpop.f32.mrb[12].mxu0  ;;  %858 = vmatprep.subr.bf16.mxu1 %v857_v10  ;;  %v624_v11 = vld [vmem:[#allocation6 + $0x8] sm:$0x3f] }
 0x13f   :  { %v283_v15 = vadd.f32 %v772_v14, %v1162_v36  ;;  %v277_v16 = vpop.f32.mrb[13].mxu0  ;;  %860 = vmatpush3.bf16.msra.mxu1 %v857_v10  ;;  %v623_v10 = vld [vmem:[#allocation6] sm:$0x3f] }
 0x140   :  { %v861_v17 = vpack.c.bf16 %v307_v12, %v306_v13  ;;  %v278_v18 = vadd.f32 %v1162_v36, %v277_v16 }
 0x141   :  { %v309_v19 = vmax.f32 %v283_v15, 0.0 }
 0x142   :  { %v308_v20 = vmax.f32 %v278_v18, 0.0  ;;  %v775_v21 = vpop.f32.mrb[14].mxu0  ;;  %862 = vmatprep.subr.bf16.mxu1 %v861_v17 }
 0x143   :  { %v293_v22 = vadd.f32 %v775_v21, %v1162_v36  ;;  %v287_v23 = vpop.f32.mrb[15].mxu0  ;;  %864 = vmatpush3.bf16.msra.mxu1 %v861_v17  ;;  %v626_v21 = vld [vmem:[#allocation6 + $0x18] sm:$0x3f] }
 0x144   :  { %v865_v24 = vpack.c.bf16 %v309_v19, %v308_v20  ;;  %v288_v25 = vadd.f32 %v1162_v36, %v287_v23  ;;  %v433_v36 = vld [vmem:[#allocation4] sm:$0xff]  ;;  %v625_v20 = vld [vmem:[#allocation6 + $0x10] sm:$0x3f] }
 0x145   :  { %v311_v26 = vmax.f32 %v293_v22, 0.0  ;;  %v875_v39 = vpack.c.bf16 %v437_v38, %v433_v36 }
 0x146   :  { %v310_v27 = vmax.f32 %v288_v25, 0.0  ;;  %866 = vmatprep.subr.bf16.mxu1 %v865_v24 }
 0x147   :  { %868 = vmatpush3.bf16.msra.mxu1 %v865_v24 }
 0x148   :  { %v869_v28 = vpack.c.bf16 %v311_v26, %v310_v27 }
 0x14a   :  { %870 = vmatprep.subr.bf16.mxu1 %v869_v28 }
 0x14b   :  { %872 = vmatpush3.bf16.msra.mxu1 %v869_v28 }
 0x14c   :  { %874 = vmatprep.subr.bf16.mxu1 %v873_v37 }
 0x14e   :  { %809 = vmatmul.mubr.f32.vlgmr.msra.gmra.mrb[0].mxu1 %v313_v29 }
 0x14f   :  { %811 = vmatprep.mubr.f32.mxu1 %v314_v30  ;;  %876 = vmatpush1.bf16.msra.mxu1 %v875_v39 }
 0x150   :  { %879 = vmatprep.subr.msk.bf16.mxu1 %vm1180_vm4, %v877_v42 }
 0x152   :  { %812 = vmatmul.mubr.f32.gmra.mrb[2].mxu1 %v315_v31 }
 0x153   :  { %814 = vmatprep.mubr.f32.mxu1 %v316_v32  ;;  %882 = vmatpush1.bf16.msk.msra.mxu1 %vm1180_vm4, %v880_v46 }
 0x154   :  { %884 = vmatprep.subr.bf16.mxu1 %v883_v49 }
 0x156   :  { %815 = vmatmul.mubr.f32.gmra.mrb[4].mxu1 %v317_v33 }
 0x157   :  { %533 = vmatprep.mubr.f32.mxu1 %v982_v50 }
 0x221   :  { %v810_v51 = vpop.f32.mrb[0].mxu1 }
 0x222   :  { %v384_v52 = vpop.f32.mrb[1].mxu1 }
 0x225   :  { %v813_v53 = vpop.f32.mrb[2].mxu1 }
 0x226   :  { %417 = vrot.lane.b32.xlu1 %v813_v53, %s983_s0  ;;  %v394_v54 = vpop.f32.mrb[3].mxu1 }
 0x227   :  { %415 = vrot.lane.b32.xlu0 %v394_v54, %s983_s0 }
 0x229   :  { %v816_v55 = vpop.f32.mrb[4].mxu1 }
 0x22a   :  { %427 = vrot.lane.b32.xlu1 %v816_v55, %s984_s2  ;;  %v404_v56 = vpop.f32.mrb[5].mxu1 }
 0x22b   :  { %425 = vrot.lane.b32.xlu0 %v404_v56, %s984_s2 }
 0x298   :  { %v418_v57 = vpop.permute.xlu1 %417 }
 0x299   :  { %v416_v58 = vpop.permute.xlu0 %415  ;;  %v422_v7 = vadd.f32 %v810_v51, %v418_v57 }
 0x29a   :  { %v421_v63 = vadd.f32 %v416_v58, %v384_v52 }
 0x29c   :  { %v428_v6 = vpop.permute.xlu1 %427 }
 0x29d   :  { %v426_v0 = vpop.permute.xlu0 %425  ;;  %v432_v9 = vadd.f32 %v428_v6, %v422_v7 }
 0x29e   :  { %v431_v2 = vadd.f32 %v426_v0, %v421_v63 }
 0x2a0   :  { %669 = vmatmul.mubr.msk.f32.vlgmr.msra.gmra.mrb[6].mxu1 %vm449_vm5, %v431_v2 }
 0x2a1   :  { %886 = vmatpush1.bf16.msra.mxu1 %v885_v1  ;;  %539 = vmatprep.mubr.f32.mxu1 %v982_v50 }
 0x2a2   :  { %889 = vmatprep.subr.msk.bf16.mxu1 %vm1180_vm4, %v887_v3 }
 0x2a4   :  { %670 = vmatmul.mubr.msk.f32.gmra.mrb[8].mxu1 %vm449_vm5, %v432_v9 }
 0x2a5   :  { %892 = vmatpush1.bf16.msk.msra.mxu1 %vm1180_vm4, %v890_v8  ;;  %610 = vmatprep.mubr.f32.mxu1 %v982_v50 }
 0x2a8   :  { %673 = vmatmul.mubr.msk.f32.vlgmr.msra.gmra.mrb[10].mxu1 %vm449_vm5, %v431_v2 }
 0x2a9   :  { %616 = vmatprep.mubr.f32.mxu1 %v982_v50 }
 0x2ac   :  { %674 = vmatmul.mubr.msk.f32.gmra.mrb[12].mxu1 %vm449_vm5, %v432_v9 }
 0x373   :  { %v535_v12 = vpop.f32.mrb[6].mxu1 }
 0x374   :  { %v627_v13 = vadd.f32 %v623_v10, %v535_v12  ;;  %v537_v14 = vpop.f32.mrb[7].mxu1 }
 0x375   :  { %v628_v15 = vadd.f32 %v624_v11, %v537_v14 }
 0x376   :  { %635 = vst [vmem:[%s1226_s6] sm:$0x3f] %v627_v13 }
 0x377   :  { %636 = vst [vmem:[%s1226_s6 + $0x8] sm:$0x3f] %v628_v15  ;;  %v541_v16 = vpop.f32.mrb[8].mxu1 }
 0x378   :  { %v631_v17 = vadd.f32 %v623_v10, %v541_v16  ;;  %v543_v18 = vpop.f32.mrb[9].mxu1 }
 0x379   :  { %v632_v19 = vadd.f32 %v624_v11, %v543_v18 }
 0x37a   :  { %639 = vst [vmem:[%s1226_s6 + $0x20] sm:$0x3f] %v631_v17 }
 0x37b   :  { %640 = vst [vmem:[%s1226_s6 + $0x28] sm:$0x3f] %v632_v19  ;;  %v612_v22 = vpop.f32.mrb[10].mxu1 }
 0x37c   :  { %v629_v23 = vadd.f32 %v625_v20, %v612_v22  ;;  %v614_v24 = vpop.f32.mrb[11].mxu1 }
 0x37d   :  { %v630_v25 = vadd.f32 %v626_v21, %v614_v24 }
 0x37e   :  { %637 = vst [vmem:[%s1226_s6 + $0x10] sm:$0x3f] %v629_v23 }
 0x37f   :  { %638 = vst [vmem:[%s1226_s6 + $0x18] sm:$0x3f] %v630_v25  ;;  %v618_v26 = vpop.f32.mrb[12].mxu1 }
 0x380   :  { %v633_v27 = vadd.f32 %v625_v20, %v618_v26  ;;  %v620_v28 = vpop.f32.mrb[13].mxu1 }
 0x381   :  { %v634_v29 = vadd.f32 %v626_v21, %v620_v28 }
 0x382   :  { %641 = vst [vmem:[%s1226_s6 + $0x30] sm:$0x3f] %v633_v27 }
 0x383   :  { %642 = vst [vmem:[%s1226_s6 + $0x38] sm:$0x3f] %v634_v29 }
 0x384   :  { %647 = vsyncpa [#allocation3], 1 }
 0x385   :  { %648 = vsyncpa [#allocation5], 1 }

</bundles_post_ra>
